<compile_context>
chip_gen: v7x
topology: tpu7x:2x2x1
jax: 0.10.0
libtpu: 0.0.40
codegen_flags: <defaults>
</compile_context>

<pallas_src>
import functools

import jax
import jax.numpy as jnp
from jax import lax
from jax.experimental import pallas as pl
from jax.experimental.pallas import tpu as pltpu


# Set True to stream features as bf16 (accumulation stays f32). Small numerics
# change vs. the f32 PyTorch reference, ~2x fewer streamed bytes when HBM-bound.
CAST_FEATURES_TO_BF16 = False

# None = auto-detect TensorCores per chip; set to 2 to force the dual-TC
# k-split (v7x).  v5e/v6e have a single TensorCore -> 1.
NUM_CORE_SPLITS = None


def _round_up(x, mult):
    return ((x + mult - 1) // mult) * mult


def _tpu_params():
    """Best-effort (vmem_capacity_bytes, tensorcores_per_chip)."""
    vmem_cap = 64 << 20          # conservative default (v7x per-TC VMEM)
    num_cores = 1
    try:
        info = pltpu.get_tpu_info()
        vmem_cap = int(getattr(info, "vmem_capacity_bytes", vmem_cap))
        for name in ("tensorcores_per_chip", "cores_per_chip", "num_tensorcores"):
            v = getattr(info, name, None)
            if v:
                num_cores = int(v)
                break
    except Exception:
        pass
    return vmem_cap, max(1, min(num_cores, 2))


def _choose_tile_k(n, m, dtype_bytes, feat_budget_bytes):
    """Reduction tile along m = c*d: lane-aligned, VMEM-sized, >=4 grid steps."""
    n_sub = _round_up(max(n, 8), 8)
    # Largest tk the double-buffered (n, tk) feature tiles can afford.
    tk_vmem = feat_budget_bytes // (2 * n_sub * dtype_bytes)
    tk_vmem = max(128, (tk_vmem // 128) * 128)
    # Keep >= ~4 pipeline steps so DMA prologue/epilogue hides behind the MXU.
    tk_depth = max(128, ((m // 4) // 128) * 128)
    tk = min(tk_vmem, tk_depth, 4096, _round_up(m, 128))
    return int(max(tk, 128))


def _plan(n, m, dtype_bytes, with_target):
    """Pick (tk, vmem_limit_bytes, num_core_splits) for this problem size."""
    vmem_cap, detected_cores = _tpu_params()
    num_splits = int(NUM_CORE_SPLITS) if NUM_CORE_SPLITS else detected_cores
    num_splits = max(1, min(num_splits, 2))

    vmem_limit_cap = (vmem_cap * 3) // 4          # ~48 MiB on v7x, ~96 MiB on v5e/v6e
    n_sub = _round_up(max(n, 8), 8)
    n_lane = _round_up(max(n, 128), 128)
    gram_tile = n_sub * n_lane * 4
    # Resident gram output (assume double-buffered to be safe) plus, for the
    # fused loss path, the resident target (double-buffered) and f32 scratch.
    gram_bytes = 2 * gram_tile + (3 * gram_tile if with_target else 0)
    slack = 2 << 20
    feat_budget = max(vmem_limit_cap - gram_bytes - slack,
                      2 * n_sub * 128 * dtype_bytes)
    tk = _choose_tile_k(n, m, dtype_bytes, feat_budget)
    feat_bytes = 2 * n_sub * tk * dtype_bytes
    vmem_limit = int(min(max(feat_bytes + gram_bytes + slack, 16 << 20),
                         vmem_limit_cap))
    return tk, vmem_limit, num_splits


def _prepare_features(x):
    """(a,b,c,d) -> (n, m) feature matrix (no padding, no extra HBM pass)."""
    a, b, c, d = x.shape
    n, m = a * b, c * d
    feats = x.reshape(n, m)                      # glue: view(a*b, c*d)
    if CAST_FEATURES_TO_BF16 and feats.dtype == jnp.float32:
        feats = feats.astype(jnp.bfloat16)
    return feats, n, m


def _masked_tile(feat_ref, gk, *, tk, m, needs_mask):
    """Load this step's (n, tk) feature tile; zero logical columns >= m."""
    f = feat_ref[...]
    if needs_mask:
        col = gk * tk + lax.broadcasted_iota(jnp.int32, f.shape, 1)
        f = jnp.where(col < m, f, jnp.zeros_like(f))
    return f


def _partial_gram(f):
    """F_tile @ F_tile^T, contracting the last dim of both operands (no .T)."""
    return lax.dot_general(
        f, f,
        dimension_numbers=(((1,), (1,)), ((), ())),
        preferred_element_type=jnp.float32,
    )


def _gram_kernel(feat_ref, g_ref, *, tk, m, split_steps, needs_mask, inv_total):
    """Grid (num_splits, split_steps): accumulate directly into the resident
    output block (no scratch); scale by 1/(a*b*c*d) on the final k step."""
    c = pl.program_id(0)
    k = pl.program_id(1)

    @pl.when(k == 0)
    def _():
        g_ref[...] = jnp.zeros_like(g_ref)

    gk = c * split_steps + k                     # logical k-block index
    f = _masked_tile(feat_ref, gk, tk=tk, m=m, needs_mask=needs_mask)
    g_ref[0] = g_ref[0] + _partial_gram(f)

    @pl.when(k == pl.num_programs(1) - 1)
    def _():
        g_ref[...] = g_ref[...] * inv_total


def _style_loss_kernel(feat_ref, tgt_ref, loss_ref, acc_ref, *, tk, m,
                       needs_mask, inv_total, inv_gram_size):
    """Single-core fused path: gram reduction + MSE vs. target in one kernel."""
    k = pl.program_id(0)

    @pl.when(k == 0)
    def _():
        acc_ref[...] = jnp.zeros_like(acc_ref)

    f = _masked_tile(feat_ref, k, tk=tk, m=m, needs_mask=needs_mask)
    acc_ref[...] += _partial_gram(f)

    @pl.when(k == pl.num_programs(0) - 1)
    def _():
        diff = acc_ref[...] * inv_total - tgt_ref[...]
        loss_ref[...] = (jnp.sum(diff * diff) * inv_gram_size).reshape(1, 1)


def _gram_partials(feats, n, m, tk, vmem_limit, num_splits, inv_total):
    """(num_splits, n, n) per-core partial grams (already scaled by inv_total)."""
    dtype_bytes = jnp.dtype(feats.dtype).itemsize
    num_k = pl.cdiv(m, tk)
    split_steps = pl.cdiv(num_k, num_splits)
    last_block = num_k - 1
    clamp = (num_splits * split_steps) > num_k          # phantom steps on last core
    needs_mask = (num_splits * split_steps * tk) != m   # ragged or phantom tiles

    def feat_index(c, k):
        gk = c * split_steps + k
        if clamp:
            gk = jnp.minimum(gk, last_block)
        return (0, gk)

    return pl.pallas_call(
        functools.partial(_gram_kernel, tk=tk, m=m, split_steps=split_steps,
                          needs_mask=needs_mask, inv_total=inv_total),
        grid=(num_splits, split_steps),
        in_specs=[pl.BlockSpec((n, tk), feat_index)],
        out_specs=pl.BlockSpec((1, n, n), lambda c, k: (c, 0, 0)),
        out_shape=jax.ShapeDtypeStruct((num_splits, n, n), jnp.float32),
        compiler_params=pltpu.CompilerParams(
            dimension_semantics=("parallel", "arbitrary"),
            vmem_limit_bytes=vmem_limit,
        ),
        cost_estimate=pl.CostEstimate(
            flops=2 * n * n * m,
            transcendentals=0,
            bytes_accessed=n * m * dtype_bytes + num_splits * n * n * 4,
        ),
    )(feats)


def gram_matrix(x):
    """Pallas equivalent of the PyTorch gram_matrix helper."""
    a, b, c, d = x.shape
    feats, n, m = _prepare_features(x)
    dtype_bytes = jnp.dtype(feats.dtype).itemsize
    tk, vmem_limit, num_splits = _plan(n, m, dtype_bytes, with_target=False)
    inv_total = 1.0 / float(a * b * c * d)
    partials = _gram_partials(feats, n, m, tk, vmem_limit, num_splits, inv_total)
    if num_splits == 1:
        return partials[0]
    return partials.sum(axis=0)       # partials already scaled; sum is linear


class StyleLoss:
    """JAX/Pallas mirror of the PyTorch StyleLoss module.

    __init__ precomputes the (detached) target gram matrix; __call__ computes
    the gram matrix of the input, the MSE loss vs. the target (fused into the
    final grid step on single-core chips), stores it in self.loss, and returns
    the input unchanged.
    """

    def __init__(self, target_feature):
        self.target = jax.lax.stop_gradient(gram_matrix(target_feature))
        self.loss = None

    def __call__(self, x):
        a, b, c, d = x.shape
        feats, n, m = _prepare_features(x)
        dtype_bytes = jnp.dtype(feats.dtype).itemsize
        inv_total = 1.0 / float(a * b * c * d)
        inv_gram_size = 1.0 / float(n * n)            # F.mse_loss reduction='mean'
        tk, vmem_limit, num_splits = _plan(n, m, dtype_bytes, with_target=True)

        if num_splits > 1:
            # Dual-TensorCore path (v7x): the HBM-heavy k-reduction is split
            # across cores (disjoint reads); the tiny (n, n) MSE finalization
            # runs as plain XLA glue (negligible vs. the streamed reduction).
            g = gram_matrix(x)
            self.loss = jnp.mean((g - self.target.astype(jnp.float32)) ** 2)
            return x

        num_k = pl.cdiv(m, tk)
        needs_mask = (num_k * tk) != m
        loss = pl.pallas_call(
            functools.partial(
                _style_loss_kernel, tk=tk, m=m, needs_mask=needs_mask,
                inv_total=inv_total, inv_gram_size=inv_gram_size,
            ),
            grid=(num_k,),
            in_specs=[
                pl.BlockSpec((n, tk), lambda k: (0, k)),   # streamed feature tiles
                pl.BlockSpec((n, n), lambda k: (0, 0)),    # resident target gram
            ],
            out_specs=pl.BlockSpec((1, 1), lambda k: (0, 0)),
            out_shape=jax.ShapeDtypeStruct((1, 1), jnp.float32),
            scratch_shapes=[pltpu.VMEM((n, n), jnp.float32)],
            compiler_params=pltpu.CompilerParams(
                dimension_semantics=("arbitrary",),
                vmem_limit_bytes=vmem_limit,
            ),
            cost_estimate=pl.CostEstimate(
                flops=2 * n * n * m + 3 * n * n,
                transcendentals=0,
                bytes_accessed=n * m * dtype_bytes + n * n * 4 + 4,
            ),
        )(feats, self.target.astype(jnp.float32))
        # TODO(synk): wrap in jax.custom_vjp with a backward kernel
        # (dF = 4/(n*n*total) * (G - T) @ F) if gradients through the loss are needed.
        self.loss = loss[0, 0]
        return x                                   # forward returns input unchanged


if __name__ == "__main__":
    key = jax.random.PRNGKey(0)
    k1, k2 = jax.random.split(key)

    # NCHW, matching the PyTorch module's expected 4-D feature maps.
    target_feature = jax.random.normal(k1, (2, 4, 16, 16), dtype=jnp.float32)
    x = jax.random.normal(k2, (2, 4, 16, 16), dtype=jnp.float32)

    module = StyleLoss(target_feature)
    out = module(x)
    jax.block_until_ready(out)
    jax.block_until_ready(module.loss)

    # Pure-JAX reference check (same semantics as the PyTorch code).
    def ref_gram(t):
        a, b, c, d = t.shape
        f = t.reshape(a * b, c * d)
        return (f @ f.T) / (a * b * c * d)

    ref_loss = jnp.mean((ref_gram(x) - ref_gram(target_feature)) ** 2)
    assert jnp.allclose(module.loss, ref_loss, rtol=1e-5, atol=1e-6), (
        float(module.loss), float(ref_loss))
    assert jnp.array_equal(out, x)

    print("KERNEL_OK")
</pallas_src>

<mosaic_0001>
module attributes {stable_mosaic.version = 11 : i64} {
  func.func @_gram_kernel(%arg0: i32, %arg1: i32, %arg2: memref<8x128xf32, #tpu.memory_space<vmem>>, %arg3: memref<1x8x8xf32, #tpu.memory_space<vmem>>) attributes {dimension_semantics = [#tpu.dimension_semantics<parallel>, #tpu.dimension_semantics<arbitrary>], iteration_bounds = array<i64: 1, 2>, scalar_prefetch = 0 : i64, scratch_operands = 0 : i64, tpu.core_type = #tpu.core_type<tc>, window_params = [{transform_indices = @transform_0, window_bounds = array<i64: 8, 128>}, {transform_indices = @transform_1, window_bounds = array<i64: 1, 8, 8>}]} {
    %c0_i32 = arith.constant 0 : i32
    %0 = arith.cmpi eq, %arg1, %c0_i32 : i32
    %1 = arith.extui %0 : i1 to i32
    %c0_i32_0 = arith.constant 0 : i32
    %2 = arith.cmpi ne, %1, %c0_i32_0 : i32
    scf.if %2 {
      %cst_9 = arith.constant 0.000000e+00 : f32
      %14 = vector.broadcast %cst_9 : f32 to vector<1x8x8xf32>
      %c0_10 = arith.constant 0 : index
      %c0_11 = arith.constant 0 : index
      %c0_12 = arith.constant 0 : index
      %15 = vector.load %arg3[%c0_10, %c0_11, %c0_12] : memref<1x8x8xf32, #tpu.memory_space<vmem>>, vector<1x8x8xf32>
      tpu.vector_store %arg3[%c0_10, %c0_11, %c0_12], %14 {strides = array<i32>} : memref<1x8x8xf32, #tpu.memory_space<vmem>>, vector<1x8x8xf32>,
    } else {
    }
    %c0 = arith.constant 0 : index
    %c0_1 = arith.constant 0 : index
    %3 = vector.load %arg2[%c0, %c0_1] : memref<8x128xf32, #tpu.memory_space<vmem>>, vector<8x128xf32>
    %c0_2 = arith.constant 0 : index
    %c0_3 = arith.constant 0 : index
    %c0_4 = arith.constant 0 : index
    %4 = vector.load %arg3[%c0_2, %c0_3, %c0_4] : memref<1x8x8xf32, #tpu.memory_space<vmem>>, vector<1x8x8xf32>
    %5 = vector.shape_cast %4 : vector<1x8x8xf32> to vector<8x8xf32>
    %cst = arith.constant dense<0.000000e+00> : vector<8x8xf32>
    %6 = tpu.matmul %3, %3, %cst {dimension_numbers = #tpu.dot_dimension_numbers<[1], [1], [0], [0], [0, 0, 1, 0], [], []>} : vector<8x128xf32>, vector<8x128xf32>, vector<8x8xf32> -> vector<8x8xf32>
    %7 = arith.addf %5, %6 : vector<8x8xf32>
    %c0_5 = arith.constant 0 : index
    %c0_6 = arith.constant 0 : index
    %c0_7 = arith.constant 0 : index
    %8 = vector.load %arg3[%c0_5, %c0_6, %c0_7] : memref<1x8x8xf32, #tpu.memory_space<vmem>>, vector<1x8x8xf32>
    %9 = vector.shape_cast %8 : vector<1x8x8xf32> to vector<8x8xf32>
    %10 = vector.shape_cast %7 : vector<8x8xf32> to vector<1x8x8xf32>
    tpu.vector_store %arg3[%c0_5, %c0_6, %c0_7], %10 {strides = array<i32>} : memref<1x8x8xf32, #tpu.memory_space<vmem>>, vector<1x8x8xf32>,
    %c1_i32 = arith.constant 1 : i32
    %11 = arith.cmpi eq, %arg1, %c1_i32 : i32
    %12 = arith.extui %11 : i1 to i32
    %c0_i32_8 = arith.constant 0 : i32
    %13 = arith.cmpi ne, %12, %c0_i32_8 : i32
    scf.if %13 {
      %c0_9 = arith.constant 0 : index
      %c0_10 = arith.constant 0 : index
      %c0_11 = arith.constant 0 : index
      %14 = vector.load %arg3[%c0_9, %c0_10, %c0_11] : memref<1x8x8xf32, #tpu.memory_space<vmem>>, vector<1x8x8xf32>
      %cst_12 = arith.constant 4.8828125E-4 : f32
      %15 = vector.broadcast %cst_12 : f32 to vector<1x8x8xf32>
      %16 = arith.mulf %14, %15 : vector<1x8x8xf32>
      %c0_13 = arith.constant 0 : index
      %c0_14 = arith.constant 0 : index
      %c0_15 = arith.constant 0 : index
      %17 = vector.load %arg3[%c0_13, %c0_14, %c0_15] : memref<1x8x8xf32, #tpu.memory_space<vmem>>, vector<1x8x8xf32>
      tpu.vector_store %arg3[%c0_13, %c0_14, %c0_15], %16 {strides = array<i32>} : memref<1x8x8xf32, #tpu.memory_space<vmem>>, vector<1x8x8xf32>,
    } else {
    }
    return
  }
  func.func @transform_0(%arg0: i32, %arg1: i32) -> (i32, i32) {
    %c2_i32 = arith.constant 2 : i32
    %0 = arith.muli %arg0, %c2_i32 : i32
    %1 = arith.addi %0, %arg1 : i32
    %c0_i32 = arith.constant 0 : i32
    %c0_i32_0 = arith.constant 0 : i32
    return %c0_i32, %1 : i32, i32
  }
  func.func @transform_1(%arg0: i32, %arg1: i32) -> (i32, i32, i32) {
    %c0_i32 = arith.constant 0 : i32
    %c0_i32_0 = arith.constant 0 : i32
    %c0_i32_1 = arith.constant 0 : i32
    return %arg0, %c0_i32, %c0_i32_0 : i32, i32, i32
  }
}

</mosaic_0001>

<bundles_post_ra>
// kernel: tpu_custom_call.1
= control target key start
LH: loop header
LB: loop body
LE: loop exit
PB: predicated region body
PF: predicated region fallthrough
CT: control target
= control target key end

     0   :  { %6 = vsyncpa [#allocation3], 0  ;;  %s669_s0 = inlined_call_operand.hbm [shape: f32[8,256], index: 0, kind: input, shape index: {}]   ;;  %s670_s1 = inlined_call_operand.hbm [shape: f32[1,8,8], index: 1, kind: output, shape index: {}]  }
   0x1   :  { %8 = vsyncpa [#allocation3 + $0x1], 0 }
   0x2   :  { %9 = vsyncpa [#allocation4], 0  ;;  %s517_s6 = smov 0   ;;  %s519_s7 = smov 0  }
   0x3   :  { %s521_s8 = smov 0   ;;  %s523_s9 = smov 0  }
   0x4   :  { %s525_s10 = smov 0   ;;  %s527_s11 = smov 0  }
   0x5 LB: > { %s305_s12 = sadd.s32 4294967295, %s500_s11   ;;  %s24_s13 = sadd.s32 1, %s496_s10  ;;  %s500_s11 = sphi %s527_s11, %s15_s11   ;;  %s496_s10 = sphi %s525_s10, %s681_s10   ;;  %s492_s9 = sphi %s523_s9, %s680_s9   ;;  %s488_s8 = sphi %s521_s8, %s679_s8   ;;  %s484_s7 = sphi %s519_s7, %s678_s7   ;;  %s480_s6 = sphi %s517_s6, %s677_s6  }
   0x6   : > { %p25_p0 = scmp.ge.s32.totalorder %s24_s13, 2  ;;  %s38_s14 = sadd.s32 1, %s488_s8 }
   0x7   : > { %p45_p1 = scmp.ne.s32.totalorder %s488_s8, %s484_s7  ;;  %p46_p2 = scmp.eq.s32.totalorder %s500_s11, 0 }
   0x8   : > { %s683_s13 = smov (%p25_p0, %s24_s13), 0  ;;  %p51_p4 = scmp.ne.s32.totalorder %s484_s7, %s480_s6 }
   0x9   : > { %p553_p3 = por %p46_p2, %p45_p1  ;;  %s35_s16 = ssub.s32 %s496_s10, %s683_s13 }
   0xa   : > { %p52_p5 = scmp.eq.s32.totalorder %s305_s12, 0  ;;  %p36_p6 = scmp.eq.s32.totalorder %s35_s16, 0 }
   0xb   : > { %p335_p8 = scmp.lt.s32.totalorder %s500_s11, 2  ;;  %s101_s19 = sand.u32 1, %s488_s8  }
   0xc   : > { %p562_p7 = por %p52_p5, %p51_p4  ;;  %s309_s20 = sshll.u32 %s496_s10, 7 }
   0xd   : > { %s568_s18 = scalar_select %p36_p6, %s488_s8, %s38_s14  }
   0xe   : > { %s308_s21 = sshll.u32 %s101_s19, 3  ;;  %s575_s24 = scalar_lea.hbm %s669_s0, %s309_s20 }
   0xf   : > { %s105_s25 = scalar_lea.vmem [#allocation2], %s308_s21  ;;  %p579_p9 = pnand %p335_p8, %p553_p3 }
  0x10   : > { %s114_s26 = sshll.u32 %s105_s25, 4  ;;  %s102_s28 = scalar_lea.sflag [#allocation3], %s101_s19  ;;  %s583_s26 = int_to_ptr.vmem [resolvable:$true] %s114_s26 }
  0x11   : > { %s390_s29 = scalar_lea.hbm %s575_s24, 128  ;;  %p392_p13 = pneg %p579_p9 }
  0x12   : > { %p391_p12 = scmp.ne.s32.totalorder %s575_s24, %s390_s29  ;;  %s395_s3 = scalar_lea.hbm %s669_s0, 256 }
  0x13   : > { %p396_p2 = scmp.lt.u32.totalorder %s575_s24, %s669_s0  ;;  %p397_p3 = scmp.lt.u32.totalorder %s395_s3, %s390_s29 }
  0x14   : > { %p393_p0 = pnand %p392_p13, %p391_p12  ;;  %p399_p5 = scmp.lt.u32.totalorder %s390_s29, %s575_s24 }
  0x15   : > { %p398_p4 = por %p397_p3, %p396_p2 }
  0x16   : > { %p394_p1 = pneg %p393_p0 }
  0x17   : > { %p400_p6 = por %p399_p5, %p398_p4 }
  0x19   : > { %p401_p8 = pnand %p400_p6, %p394_p1 }
  0x1b   : > { %404 = shalt.err (!%p401_p8)
}
  0x1c   : > { %s405_s6 = scalar_lea.vmem %s583_s26, 128  ;;  %s502_s14 = smov [#allocation2]  }
  0x1d   : > { %p406_p12 = scmp.ne.s32.totalorder %s583_s26, %s405_s6  ;;  %s410_s15 = sshll.u32 %s502_s14, 4  ;;  %s411_s15 = int_to_ptr.vmem [resolvable:$false] %s410_s15 }
  0x1e   : > { %s412_s16 = scalar_lea.vmem %s411_s15, 256  ;;  %p413_p11 = scmp.lt.s32.totalorder %s583_s26, %s411_s15 }
  0x1f   : > { %p408_p0 = pnand %p406_p12, %p392_p13  ;;  %p414_p2 = scmp.lt.s32.totalorder %s412_s16, %s405_s6 }
  0x21   : > { %p409_p10 = pneg %p408_p0  ;;  %p415_p3 = por %p414_p2, %p413_p11 }
  0x23   : > { %p416_p4 = pnand %p415_p3, %p409_p10 }
  0x25   : > { %419 = shalt.err (!%p416_p4)
}
  0x26   : > { %334 = dma.hbm_to_vmem [thread:$0]  (!%p579_p9), %s575_s24, 128, %s583_s26, %s102_s28  }
  0x27   : > { %p674_p1 = scmp.lt.s32.totalorder %s500_s11, 3  ;;  %p675_p5 = scmp.ge.s32.totalorder %s500_s11, 1 }
  0x29   : > { %p120_p13 = pnand %p675_p5, %p674_p1 }
  0x2a   : > { %s125_s19 = sand.u32 (!%p120_p13), 1, %s484_s7  }
  0x2b   : > { %123 = sbr.rel (%p120_p13) target bundleno = 315 (0x13b), region = 24  ;;  %s311_s20 = sshll.u32 (!%p120_p13), %s125_s19, 3 }
  0x2c   : > { %s126_s21 = scalar_lea.sflag (!%p120_p13), [#allocation3], %s125_s19  ;;  %s129_s22 = scalar_lea.vmem (!%p120_p13), [#allocation2], %s311_s20 }
  0x32   : > { %471 = dma.done.wait (%p562_p7), %s126_s21, 128  }
  0x33   : > { %473 = vsyncadd (%p562_p7), %s126_s21, 4294967168  ;;  %p312_p10 = scmp.ne.s32.totalorder %s492_s9, 0 }
  0x34   : > { %vm149_vm0 = vcmask (!%p312_p10), 64512   ;;  %v503_v0 = vmov (!%p312_p10), 0.0  }
  0x35   : > { %148 = sbr.rel (%p312_p10) target bundleno = 60 (0x3c), region = 32  ;;  %150 = vst.msk [vmem:[#allocation5] sm:$0xff] (!%p312_p10), %vm149_vm0, %v503_v0 }
  0x3c PF: > { %v151_v1 = vld [vmem:[%s129_s22] sm:$0xff]  ;;  %v504_v2 = vmov 0.0   ;;  %vm505_vm1 = vmmov 0   ;;  %v152_v3 = vld [vmem:[#allocation5] sm:$0xff]  ;;  %vm224_vm2 = vcmask 64512   ;;  %p313_p7 = scmp.ne.s32.totalorder %s492_s9, 1 }
  0x3d   : > { %320 = vmatprep.subr.mxu0 %v504_v2  ;;  %322 = vmatprep.mubr.msk.f32.mxu0 %vm505_vm1, %v504_v2 }
  0x3e   : > { %321 = vmatpush3.xpose.msra.mxu0 %v151_v1 }
  0x41   : > { %323 = vmatmul.mubr.f32.vlgmr.msra.gmra.mrb[0].mxu0 %v151_v1 }
 0x111   : > { %229 = sbr.rel (%p313_p7) target bundleno = 290 (0x122), region = 36 }
 0x114   : > { %v219_v4 = vpop.f32.mrb[0].mxu0 }
 0x115   : > { %v223_v5 = vadd.f32 %v219_v4, %v152_v3  ;;  %v324_v6 = vpop.f32.mrb[1].mxu0 }
 0x117   : > { %225 = vst.msk [vmem:[#allocation5] sm:$0xff] %vm224_vm2, %v223_v5 }
 0x11e   : > { %v230_v7 = vld [vmem:[#allocation5] sm:$0xff] }
 0x11f   : > { %v231_v8 = vmul.f32 0.00048828125, %v230_v7 }
 0x121   : > { %232 = vst.msk [vmem:[#allocation5] sm:$0xff] %vm224_vm2, %v231_v8 }
 0x122 PF: > { %p625_p9 = scmp.eq.s32.totalorder %s305_s12, 1  ;;  %s506_s23 = smov [#allocation5]  }
 0x123   : > { %s242_s24 = sshll.u32 %s506_s23, 4  ;;  %s243_s24 = int_to_ptr.vmem [resolvable:$true] %s242_s24 }
 0x124   : > { %s420_s25 = scalar_lea.vmem %s243_s24, 128  ;;  %p427_p12 = scmp.lt.s32.totalorder %s243_s24, %s243_s24 }
 0x125   : > { %p421_p11 = scmp.ne.s32.totalorder %s243_s24, %s420_s25  ;;  %p428_p0 = scmp.lt.s32.totalorder %s420_s25, %s420_s25 }
 0x127   : > { %p422_p6 = pnand %p421_p11, %p625_p9  ;;  %p429_p2 = por %p428_p0, %p427_p12 }
 0x129   : > { %p423_p8 = pneg %p422_p6 }
 0x12b   : > { %p430_p3 = pnand %p429_p2, %p423_p8 }
 0x12d   : > { %433 = shalt.err (!%p430_p3)
}
 0x12e   : > { %s434_s12 = scalar_lea.hbm %s670_s1, 128 }
 0x12f   : > { %p435_p4 = scmp.ne.s32.totalorder %s670_s1, %s434_s12  ;;  %p440_p13 = scmp.lt.u32.totalorder %s434_s12, %s670_s1 }
 0x131   : > { %p436_p1 = pnand %p435_p4, %p625_p9 }
 0x133   : > { %p437_p5 = pneg %p436_p1 }
 0x135   : > { %p442_p10 = pnand %p440_p13, %p437_p5 }
 0x137   : > { %445 = shalt.err (!%p442_p10)
}
 0x138   : > { %328 = dma.vmem_to_hbm [thread:$0]  (%p625_p9), %s243_s24, 128, %s670_s1, [#allocation4]  }
 0x139   : > { %475 = dma.done.wait (%p625_p9), [#allocation4], 128  }
 0x13a   : > { %477 = vsyncadd (%p625_p9), [#allocation4], 4294967168 }
 0x13b PF: > { %s15_s11 = sadd.s32 1, %s500_s11   ;;  %s677_s6 = smov %s484_s7 }
 0x13c   : > { %p12_p7 = scmp.ge.s32.totalorder %s15_s11, 4   ;;  %s678_s7 = smov %s488_s8 }
 0x13d   : > { %s679_s8 = smov %s568_s18  ;;  %s680_s9 = smov %s496_s10 }
 0x13e   : > { %s681_s10 = smov %s683_s13  ;;  %14 = sbr.rel (!%p12_p7) target bundleno = 5 (0x5), region = 70 }
 0x145   :  { %255 = vsyncpa [#allocation3], 1 }
 0x146   :  { %257 = vsyncpa [#allocation3 + $0x1], 1 }
 0x147   :  { %258 = vsyncpa [#allocation4], 1 }
 0x148   :  { %260 = vsyncpa [#allocation4 + $0x1], 1 }

</bundles_post_ra>
